<compile_context>
chip_gen: v6e
topology: v6e:2x2x1
jax: 0.10.0
libtpu: 0.0.40
codegen_flags: <defaults>
</compile_context>

<pallas_src>
import functools

import jax
import jax.numpy as jnp
from jax import lax
from jax.experimental import pallas as pl
from jax.experimental.pallas import tpu as pltpu

_LANES = 128
_SUBLANES = 8


def _mse_partial_kernel(pr_ref, gt_ref, out_ref, *,
                        block_rows, tiles_per_split, rows_valid, needs_mask):
    """Accumulates per-lane partial sums of (pr - gt)^2 into an (8,128) block.

    Grid is (splits, tiles_per_split); axis 1 is the reduction axis, so the
    output block (indexed only by axis 0) stays resident in VMEM and serves as
    the accumulator.  Cross-lane reduction / mean scaling happen outside.
    """
    i = pl.program_id(1)

    @pl.when(i == 0)
    def _():
        out_ref[...] = jnp.zeros_like(out_ref)

    diff = pr_ref[...].astype(jnp.float32) - gt_ref[...].astype(jnp.float32)

    if needs_mask:
        # Tail tile: zero contributions from rows past the real input extent.
        p = pl.program_id(0)
        row0 = (p * tiles_per_split + i) * block_rows
        row_ids = row0 + lax.broadcasted_iota(jnp.int32, (block_rows, _LANES), 0)
        diff = jnp.where(row_ids < rows_valid, diff, 0.0)

    sq = diff * diff
    if block_rows % _SUBLANES == 0:
        # Fold the tile into one vreg of partial sums (pure VPU adds).
        out_ref[...] += sq.reshape(block_rows // _SUBLANES, _SUBLANES, _LANES).sum(axis=0)
    else:
        # Tiny single-tile fallback (rows < 8 and not sublane aligned).
        out_ref[0:1, :] += jnp.sum(sq, axis=0, keepdims=True)


def pallas_mse_loss(pr, gt, *, tile_rows=2048, num_splits=2):
    """Mean squared error between two same-shaped arrays (any rank)."""
    assert pr.shape == gt.shape, "criterion expects matching pr/gt shapes"
    n = pr.size
    assert n % _LANES == 0, "flattened size must be divisible by 128 lanes"
    rows = n // _LANES

    # Lane-dense 2-D view; keep the native dtype on the wire (cast in-kernel).
    pr2 = pr.reshape(rows, _LANES)
    gt2 = gt.reshape(rows, _LANES)

    # Block sizing: full array if it is small, otherwise a large fixed tile
    # (tile_rows is a multiple of 16, so f32 and bf16 tiling are both legal).
    block_rows = rows if rows <= tile_rows else tile_rows
    tiles_total = pl.cdiv(rows, block_rows)

    # v7x: shard the reduction across the 2 TensorCores when the tile count
    # splits evenly (no effect on single-TC v5e/v6e, never produces OOB tiles).
    if num_splits > 1 and tiles_total >= num_splits and tiles_total % num_splits == 0:
        splits = num_splits
    else:
        splits = 1
    tiles_per_split = tiles_total // splits

    needs_mask = (rows % block_rows) != 0

    kernel = functools.partial(
        _mse_partial_kernel,
        block_rows=block_rows,
        tiles_per_split=tiles_per_split,
        rows_valid=rows,
        needs_mask=needs_mask,
    )

    def in_map(p, i):
        return (p * tiles_per_split + i, 0)

    in_spec = pl.BlockSpec((block_rows, _LANES), in_map)

    partials = pl.pallas_call(
        kernel,
        out_shape=jax.ShapeDtypeStruct((splits * _SUBLANES, _LANES), jnp.float32),
        grid_spec=pl.GridSpec(
            grid=(splits, tiles_per_split),
            in_specs=[in_spec, in_spec],
            out_specs=pl.BlockSpec((_SUBLANES, _LANES), lambda p, i: (p, 0)),
        ),
        compiler_params=pltpu.CompilerParams(
            dimension_semantics=("parallel", "arbitrary"),
        ),
    )(pr2, gt2)

    # Final cross-lane reduce (tiny: splits*8*128 f32) and mean scale.
    inv_n = 1.0 / float(n)  # computed in f64 on host, then folded into an f32 mul
    return jnp.sum(partials) * inv_n


class AbstractLossCalculatorPallas:
    """Mirrors AbstractLossCalculator.forward: LossValue(name, _forward(pr, gt))."""

    def __str__(self):
        return "AbstractLossCalculator"

    def _forward(self, pr, gt):
        return pallas_mse_loss(pr, gt)

    def forward(self, pr, gt):
        # aggregator (mean over elements) is folded into the kernel + wrapper.
        return {"name": str(self), "loss": self._forward(pr, gt)}

    __call__ = forward


if __name__ == "__main__":
    key = jax.random.PRNGKey(0)
    k_pr, k_gt = jax.random.split(key)

    # Primary demo: NCHW prediction / ground-truth tensors (small synthetic).
    pr = jax.random.normal(k_pr, (2, 4, 16, 16), dtype=jnp.float32)
    gt = jax.random.normal(k_gt, (2, 4, 16, 16), dtype=jnp.float32)

    calc = AbstractLossCalculatorPallas()
    result = calc(pr, gt)
    loss = jax.block_until_ready(result["loss"])
    ref = jnp.mean((pr - gt) ** 2)
    assert jnp.allclose(loss, ref, rtol=1e-5, atol=1e-5), (loss, ref)

    # Extra self-checks (still small): multi-tile + 2-way split path, and a
    # ragged tail exercising the in-kernel mask, and a bf16-on-the-wire case.
    k1, k2, k3, k4 = jax.random.split(jax.random.PRNGKey(1), 4)

    a = jax.random.normal(k1, (4, 8, 64, 80), dtype=jnp.float32)   # rows=1280
    b = jax.random.normal(k2, (4, 8, 64, 80), dtype=jnp.float32)
    out = jax.block_until_ready(pallas_mse_loss(a, b, tile_rows=128))
    assert jnp.allclose(out, jnp.mean((a - b) ** 2), rtol=1e-5, atol=1e-5)

    a = jax.random.normal(k3, (2, 5, 100, 128), dtype=jnp.float32)  # rows=1000 (masked tail)
    b = jax.random.normal(k4, (2, 5, 100, 128), dtype=jnp.float32)
    out = jax.block_until_ready(pallas_mse_loss(a, b, tile_rows=128))
    assert jnp.allclose(out, jnp.mean((a - b) ** 2), rtol=1e-5, atol=1e-5)

    pr_bf = pr.astype(jnp.bfloat16)
    gt_bf = gt.astype(jnp.bfloat16)
    out = jax.block_until_ready(pallas_mse_loss(pr_bf, gt_bf))
    ref_bf = jnp.mean((pr_bf.astype(jnp.float32) - gt_bf.astype(jnp.float32)) ** 2)
    assert jnp.allclose(out, ref_bf, rtol=1e-5, atol=1e-5)

    print("KERNEL_OK")
</pallas_src>

<mosaic_0001>
module attributes {stable_mosaic.version = 11 : i64} {
  func.func @_mse_partial_kernel(%arg0: i32, %arg1: i32, %arg2: memref<16x128xf32, #tpu.memory_space<vmem>>, %arg3: memref<16x128xf32, #tpu.memory_space<vmem>>, %arg4: memref<8x128xf32, #tpu.memory_space<vmem>>) attributes {dimension_semantics = [#tpu.dimension_semantics<parallel>, #tpu.dimension_semantics<arbitrary>], iteration_bounds = array<i64: 1, 1>, scalar_prefetch = 0 : i64, scratch_operands = 0 : i64, tpu.core_type = #tpu.core_type<tc>, window_params = [{transform_indices = @transform_0, window_bounds = array<i64: 16, 128>}, {transform_indices = @transform_1, window_bounds = array<i64: 16, 128>}, {transform_indices = @transform_2, window_bounds = array<i64: 8, 128>}]} {
    %c0_i32 = arith.constant 0 : i32
    %0 = arith.cmpi eq, %arg1, %c0_i32 : i32
    %1 = arith.extui %0 : i1 to i32
    %c0_i32_0 = arith.constant 0 : i32
    %2 = arith.cmpi ne, %1, %c0_i32_0 : i32
    scf.if %2 {
      %cst_8 = arith.constant 0.000000e+00 : f32
      %12 = vector.broadcast %cst_8 : f32 to vector<8x128xf32>
      %c0_9 = arith.constant 0 : index
      %c0_10 = arith.constant 0 : index
      %13 = vector.load %arg4[%c0_9, %c0_10] : memref<8x128xf32, #tpu.memory_space<vmem>>, vector<8x128xf32>
      tpu.vector_store %arg4[%c0_9, %c0_10], %12 {strides = array<i32>} : memref<8x128xf32, #tpu.memory_space<vmem>>, vector<8x128xf32>,
    } else {
    }
    %c0 = arith.constant 0 : index
    %c0_1 = arith.constant 0 : index
    %3 = vector.load %arg2[%c0, %c0_1] : memref<16x128xf32, #tpu.memory_space<vmem>>, vector<16x128xf32>
    %c0_2 = arith.constant 0 : index
    %c0_3 = arith.constant 0 : index
    %4 = vector.load %arg3[%c0_2, %c0_3] : memref<16x128xf32, #tpu.memory_space<vmem>>, vector<16x128xf32>
    %5 = arith.subf %3, %4 : vector<16x128xf32>
    %6 = arith.mulf %5, %5 : vector<16x128xf32>
    %c0_4 = arith.constant 0 : index
    %c0_5 = arith.constant 0 : index
    %7 = vector.load %arg4[%c0_4, %c0_5] : memref<8x128xf32, #tpu.memory_space<vmem>>, vector<8x128xf32>
    %8 = vector.shape_cast %6 : vector<16x128xf32> to vector<2x8x128xf32>
    %cst = arith.constant dense<0.000000e+00> : vector<8x128xf32>
    %9 = vector.multi_reduction <add>, %8, %cst [0] : vector<2x8x128xf32> to vector<8x128xf32>
    %10 = arith.addf %7, %9 : vector<8x128xf32>
    %c0_6 = arith.constant 0 : index
    %c0_7 = arith.constant 0 : index
    %11 = vector.load %arg4[%c0_6, %c0_7] : memref<8x128xf32, #tpu.memory_space<vmem>>, vector<8x128xf32>
    tpu.vector_store %arg4[%c0_6, %c0_7], %10 {strides = array<i32>} : memref<8x128xf32, #tpu.memory_space<vmem>>, vector<8x128xf32>,
    return
  }
  func.func @transform_0(%arg0: i32, %arg1: i32) -> (i32, i32) {
    %c1_i32 = arith.constant 1 : i32
    %0 = arith.muli %arg0, %c1_i32 : i32
    %1 = arith.addi %0, %arg1 : i32
    %c0_i32 = arith.constant 0 : i32
    %c0_i32_0 = arith.constant 0 : i32
    return %1, %c0_i32 : i32, i32
  }
  func.func @transform_1(%arg0: i32, %arg1: i32) -> (i32, i32) {
    %c1_i32 = arith.constant 1 : i32
    %0 = arith.muli %arg0, %c1_i32 : i32
    %1 = arith.addi %0, %arg1 : i32
    %c0_i32 = arith.constant 0 : i32
    %c0_i32_0 = arith.constant 0 : i32
    return %1, %c0_i32 : i32, i32
  }
  func.func @transform_2(%arg0: i32, %arg1: i32) -> (i32, i32) {
    %c0_i32 = arith.constant 0 : i32
    %c0_i32_0 = arith.constant 0 : i32
    return %arg0, %c0_i32 : i32, i32
  }
}

</mosaic_0001>

<bundles_post_ra>
// kernel: tpu_custom_call.1
= control target key start
LH: loop header
LB: loop body
LE: loop exit
PB: predicated region body
PF: predicated region fallthrough
CT: control target
= control target key end

     0   :  { %7 = vsyncpa [#allocation3], 0  ;;  %s186_s0 = inlined_call_operand.hbm [shape: f32[16,128], index: 0, kind: input, shape index: {}]   ;;  %s187_s1 = inlined_call_operand.hbm [shape: f32[16,128], index: 1, kind: input, shape index: {}]   ;;  %s188_s2 = inlined_call_operand.hbm [shape: f32[8,128], index: 2, kind: output, shape index: {}]  }
   0x1   :  { %8 = vsyncpa [#allocation6], 0 }
   0x2   :  { %9 = vsyncpa [#allocation4], 0  ;;  %s157_s9 = smov [#allocation2]  }
   0x3   :  { %s19_s10 = sshll.u32 %s157_s9, 4  ;;  %s20_s10 = int_to_ptr.vmem [resolvable:$true] %s19_s10 }
   0x4   :  { %s99_s11 = scalar_lea.vmem %s20_s10, 256  ;;  %p104_p1 = scmp.lt.s32.totalorder %s20_s10, %s20_s10 }
   0x5   :  { %p100_p0 = scmp.ne.s32.totalorder %s20_s10, %s99_s11  ;;  %p105_p2 = scmp.lt.s32.totalorder %s99_s11, %s99_s11 }
   0x7   :  { %p106_p3 = por %p105_p2, %p104_p1 }
   0x9   :  { %p107_p4 = pnand %p106_p3, %p100_p0 }
   0xb   :  { %110 = shalt.err (!%p107_p4)
}
   0xc   :  { %s158_s12 = smov 128   ;;  %s159_s13 = smov 8  }
   0xd   :  { %25 = dma.hbm_to_vmem [thread:$0]  %s186_s0, 256, %s20_s10, [#allocation3], %s158_s12, %s158_s12, %s159_s13  }
   0xe   :  { %s160_s16 = smov [#allocation5]  }
   0xf   :  { %s35_s17 = sshll.u32 %s160_s16, 4  ;;  %s36_s17 = int_to_ptr.vmem [resolvable:$true] %s35_s17 }
  0x10   :  { %s119_s18 = scalar_lea.vmem %s36_s17, 256  ;;  %p124_p6 = scmp.lt.s32.totalorder %s36_s17, %s36_s17 }
  0x11   :  { %p120_p5 = scmp.ne.s32.totalorder %s36_s17, %s119_s18  ;;  %p125_p7 = scmp.lt.s32.totalorder %s119_s18, %s119_s18 }
  0x13   :  { %p126_p8 = por %p125_p7, %p124_p6 }
  0x15   :  { %p127_p9 = pnand %p126_p8, %p120_p5 }
  0x17   :  { %130 = shalt.err (!%p127_p9)
}
  0x18   :  { %41 = dma.hbm_to_vmem [thread:$0]  %s187_s1, 256, %s36_s17, [#allocation6], %s158_s12, %s158_s12, %s159_s13  }
  0x19   :  { %151 = dma.done.wait [#allocation3], 256  }
  0x1a   :  { %152 = vsyncadd [#allocation3], 4294967040 }
  0x1b   :  { %153 = dma.done.wait [#allocation6], 256  }
  0x1c   :  { %154 = vsyncadd [#allocation6], 4294967040  ;;  %v57_v0 = vld [vmem:[#allocation2] sm:$0xff]  ;;  %v58_v1 = vld [vmem:[#allocation2 + $0x8] sm:$0xff]  ;;  %s161_s0 = smov [#allocation7]  }
  0x1d   :  { %v59_v2 = vld [vmem:[#allocation5] sm:$0xff]  ;;  %v60_v3 = vld [vmem:[#allocation5 + $0x8] sm:$0xff]  ;;  %s75_s21 = sshll.u32 %s161_s0, 4  ;;  %s76_s21 = int_to_ptr.vmem [resolvable:$true] %s75_s21 }
  0x1e   :  { %v61_v4 = vsub.f32 %v57_v0, %v59_v2  ;;  %v62_v5 = vsub.f32 %v58_v1, %v60_v3  ;;  %s131_s22 = scalar_lea.vmem %s76_s21, 128  ;;  %p136_p11 = scmp.lt.s32.totalorder %s76_s21, %s76_s21 }
  0x1f   :  { %p132_p10 = scmp.ne.s32.totalorder %s76_s21, %s131_s22  ;;  %p137_p12 = scmp.lt.s32.totalorder %s131_s22, %s131_s22 }
  0x20   :  { %v63_v6 = vmul.f32 %v61_v4, %v61_v4  ;;  %v64_v7 = vmul.f32 %v62_v5, %v62_v5 }
  0x21   :  { %p138_p13 = por %p137_p12, %p136_p11 }
  0x22   :  { %v66_v8 = vadd.f32 %v64_v7, %v63_v6 }
  0x23   :  { %p139_p0 = pnand %p138_p13, %p132_p10 }
  0x24   :  { %68 = vst [vmem:[#allocation7] sm:$0xff] %v66_v8 }
  0x25   :  { %142 = shalt.err (!%p139_p0)
}
  0x26   :  { %78 = dma.vmem_to_hbm [thread:$0]  %s76_s21, 128, %s188_s2, [#allocation4]  }
  0x27   :  { %155 = dma.done.wait [#allocation4], 128  }
  0x28   :  { %156 = vsyncadd [#allocation4], 4294967168 }
  0x29   :  { %82 = vsyncpa [#allocation3], 1 }
  0x2a   :  { %83 = vsyncpa [#allocation6], 1 }
  0x2b   :  { %84 = vsyncpa [#allocation4], 1 }

</bundles_post_ra>
